<compile_context>
chip_gen: v7x
topology: tpu7x:2x2x1
jax: 0.10.0
libtpu: 0.0.40
codegen_flags: <defaults>
</compile_context>

<pallas_src>
import functools

import jax
import jax.numpy as jnp
from jax.experimental import pallas as pl
from jax.experimental.pallas import tpu as pltpu

EPS = 1e-10
NCORES = 2  # leading "parallel" grid axis: 2-way TC split on v7x, no-op elsewhere


def _round_up(x, m):
    return ((x + m - 1) // m) * m


def _avu_kernel(unc_th_ref, logits_ref, labels_ref, part_ref,
                *, n_valid, tile_n, steps_per_core):
    core = pl.program_id(0)
    step = pl.program_id(1)

    # Per-core resident output block acts as the (num, total) accumulator.
    @pl.when(step == 0)
    def _init():
        part_ref[...] = jnp.zeros_like(part_ref)

    x = logits_ref[...].astype(jnp.float32)            # (TN, C)
    labels = labels_ref[...]                           # (TN, 1) int32
    th = unc_th_ref[0]                                 # scalar f32 (SMEM)

    # Row-wise softmax statistics WITHOUT materializing the probabilities.
    m = jnp.max(x, axis=-1, keepdims=True)             # (TN, 1)
    xs = x - m
    e = jnp.exp(xs)                                    # only per-element EUP op
    z = jnp.sum(e, axis=-1, keepdims=True)             # (TN, 1)
    s = jnp.sum(e * xs, axis=-1, keepdims=True)        # (TN, 1)

    inv_z = 1.0 / z                                    # exact (threshold stability)
    conf = inv_z                                       # max softmax prob (exp(0)=1)
    unc = jnp.log(z) - inv_z * s                       # predictive entropy

    # Accuracy via masked max: "does the label's logit attain the row max?"
    # (differs from first-index argmax only on exact float ties at the max).
    col = jax.lax.broadcasted_iota(jnp.int32, x.shape, dimension=1)
    lab_logit = jnp.max(jnp.where(col == labels, x, -jnp.inf),
                        axis=-1, keepdims=True)        # (TN, 1)
    accurate = lab_logit == m

    # Mask out batch-padding rows.
    row = jax.lax.broadcasted_iota(jnp.int32, (tile_n, 1), dimension=0)
    base = (core * steps_per_core + step) * tile_n
    valid = (row + base) < n_valid                     # (TN, 1) bool

    certain = unc <= th
    t = jnp.tanh(unc)

    # Fused masked terms: 4 masked dot-products -> 2 reductions.
    u = jnp.where(accurate, conf, 1.0 - conf) * jnp.where(certain, 1.0 - t, t)
    u = jnp.where(valid, u, 0.0)

    num_step = jnp.sum(jnp.where(accurate == certain, u, 0.0))  # n_ac + n_iu
    tot_step = jnp.sum(u)                                       # all four terms

    # Place the two scalars into a lane-dense (8, 128) slab and accumulate in
    # the resident VMEM output block (no SMEM read-modify-write chain).
    rows8 = jax.lax.broadcasted_iota(jnp.int32, (8, 128), 0)
    lanes = jax.lax.broadcasted_iota(jnp.int32, (8, 128), 1)
    slab = jnp.where((rows8 == 0) & (lanes == 0), num_step,
                     jnp.where((rows8 == 0) & (lanes == 1), tot_step, 0.0))
    part_ref[...] += slab.reshape(1, 8, 128)


def avu_loss(logits, labels, unc_th, *, beta=1.0, tile_n=None):
    """Pallas TPU implementation of AvULoss.forward.

    logits : (N, C) float (f32 or bf16 accepted)
    labels : (N,)   int
    unc_th : scalar float32 (uncertainty threshold)
    returns: (1,)   float32 loss
    """
    n, c = logits.shape
    itemsize = jnp.dtype(logits.dtype).itemsize
    # Sublane granularity (f32 -> 8, bf16 -> 16, int8/fp8 -> 32).
    sub = {4: 8, 2: 16, 1: 32}.get(itemsize, 8)

    if tile_n is None:
        # Byte-based tile sizing.  Per-row VMEM cost (lane dims pad to 128):
        #   2x logits input buffers + 2x int32 labels buffers (lane-padded)
        #   + ~6 live f32 (TN, C_pad) temporaries + ~8 f32 (TN, 1) temporaries.
        c_pad = _round_up(c, 128)
        per_row = (2 * c_pad * itemsize        # double-buffered logits block
                   + 2 * 128 * 4               # double-buffered labels block
                   + 6 * c_pad * 4             # in-kernel (TN, C) f32 temps
                   + 8 * 128 * 4)              # in-kernel (TN, 1) f32 temps
        budget = 20 << 20                      # stay well under the 40 MiB limit
        tile_n = budget // per_row
    tile_n = min(int(tile_n), 4096, _round_up(-(-n // NCORES), sub))
    tile_n = max(sub, (tile_n // sub) * sub)

    n_pad = _round_up(n, NCORES * tile_n)
    steps_per_core = n_pad // (NCORES * tile_n)

    labels = labels.astype(jnp.int32)
    if n_pad != n:
        logits = jnp.pad(logits, ((0, n_pad - n), (0, 0)))
        labels = jnp.pad(labels, ((0, n_pad - n),), constant_values=-1)

    labels2d = labels.reshape(n_pad, 1)
    th_arr = jnp.asarray(unc_th, dtype=jnp.float32).reshape(1)

    kernel = functools.partial(_avu_kernel, n_valid=n, tile_n=tile_n,
                               steps_per_core=steps_per_core)

    grid_spec = pltpu.PrefetchScalarGridSpec(
        num_scalar_prefetch=0,
        grid=(NCORES, steps_per_core),
        in_specs=[
            pl.BlockSpec(memory_space=pltpu.SMEM),                       # unc_th
            pl.BlockSpec((tile_n, c),
                         lambda ci, si: (ci * steps_per_core + si, 0)),  # logits
            pl.BlockSpec((tile_n, 1),
                         lambda ci, si: (ci * steps_per_core + si, 0)),  # labels
        ],
        out_specs=pl.BlockSpec((1, 8, 128), lambda ci, si: (ci, 0, 0)),  # partials
    )

    partials = pl.pallas_call(
        kernel,
        out_shape=jax.ShapeDtypeStruct((NCORES, 8, 128), jnp.float32),
        grid_spec=grid_spec,
        compiler_params=pltpu.CompilerParams(
            dimension_semantics=("parallel", "arbitrary"),
            vmem_limit_bytes=40 * 1024 * 1024,
        ),
    )(th_arr, logits, labels2d)

    # Scalar epilogue (tiny) in plain JAX: combine per-core partials.
    num = jnp.sum(partials[:, 0, 0])
    tot = jnp.sum(partials[:, 0, 1])
    avu = num / (tot + EPS)
    loss = -jnp.float32(beta) * jnp.log(avu + EPS)
    return loss.reshape(1)


def _avu_loss_ref(logits, labels, unc_th, beta=1.0):
    """Plain-JAX reference matching the PyTorch module semantics."""
    logits = logits.astype(jnp.float32)
    probs = jax.nn.softmax(logits, axis=1)
    conf = jnp.max(probs, axis=1)
    pred = jnp.argmax(probs, axis=1)
    unc = -jnp.sum(probs * jnp.log(probs + EPS), axis=-1)
    acc = pred == labels
    cert = unc <= unc_th
    t = jnp.tanh(unc)
    n_ac = jnp.sum(jnp.where(acc & cert, conf * (1 - t), 0.0))
    n_au = jnp.sum(jnp.where(acc & ~cert, conf * t, 0.0))
    n_ic = jnp.sum(jnp.where(~acc & cert, (1 - conf) * (1 - t), 0.0))
    n_iu = jnp.sum(jnp.where(~acc & ~cert, (1 - conf) * t, 0.0))
    avu = (n_ac + n_iu) / (n_ac + n_au + n_ic + n_iu + EPS)
    return -beta * jnp.log(avu + EPS)


if __name__ == "__main__":
    key = jax.random.PRNGKey(0)
    k1, k2 = jax.random.split(key)

    # Batch deliberately NOT a multiple of the tile / core split to exercise
    # the padded & masked tail path on both "cores".
    N, C = 13, 32
    logits = jax.random.normal(k1, (N, C), dtype=jnp.float32) * 2.0
    labels = jax.random.randint(k2, (N,), 0, C, dtype=jnp.int32)
    unc_th = jnp.float32(2.5)

    loss = jax.block_until_ready(avu_loss(logits, labels, unc_th, beta=1.0))
    ref = _avu_loss_ref(logits, labels, unc_th, beta=1.0)
    assert jnp.allclose(loss[0], ref, atol=1e-4, rtol=1e-4), (loss, ref)

    # bf16 logits accepted directly (no wrapper-side f32 copy; kernel upcasts).
    logits_bf16 = logits.astype(jnp.bfloat16)
    loss_bf16 = jax.block_until_ready(avu_loss(logits_bf16, labels, unc_th, beta=1.0))
    ref_bf16 = _avu_loss_ref(logits_bf16.astype(jnp.float32), labels, unc_th, beta=1.0)
    assert jnp.allclose(loss_bf16[0], ref_bf16, atol=1e-3, rtol=1e-3), (loss_bf16, ref_bf16)

    print("KERNEL_OK")
</pallas_src>

<mosaic_0001>
module attributes {stable_mosaic.version = 11 : i64} {
  func.func @_avu_kernel(%arg0: i32, %arg1: i32, %arg2: memref<1xf32, #tpu.memory_space<smem>>, %arg3: memref<8x32xf32, #tpu.memory_space<vmem>>, %arg4: memref<8x1xi32, #tpu.memory_space<vmem>>, %arg5: memref<1x8x128xf32, #tpu.memory_space<vmem>>) attributes {dimension_semantics = [#tpu.dimension_semantics<parallel>, #tpu.dimension_semantics<arbitrary>], iteration_bounds = array<i64: 2, 1>, scalar_prefetch = 0 : i64, scratch_operands = 0 : i64, tpu.core_type = #tpu.core_type<tc>, window_params = [{transform_indices = @transform_0, window_bounds = array<i64: 1>}, {transform_indices = @transform_1, window_bounds = array<i64: 8, 32>}, {transform_indices = @transform_2, window_bounds = array<i64: 8, 1>}, {transform_indices = @transform_3, window_bounds = array<i64: 1, 8, 128>}]} {
    %c0_i32 = arith.constant 0 : i32
    %0 = arith.cmpi eq, %arg1, %c0_i32 : i32
    %1 = arith.extui %0 : i1 to i32
    %c0_i32_0 = arith.constant 0 : i32
    %2 = arith.cmpi ne, %1, %c0_i32_0 : i32
    scf.if %2 {
      %cst_28 = arith.constant 0.000000e+00 : f32
      %82 = vector.broadcast %cst_28 : f32 to vector<1x8x128xf32>
      %c0_29 = arith.constant 0 : index
      %c0_30 = arith.constant 0 : index
      %c0_31 = arith.constant 0 : index
      %83 = vector.load %arg5[%c0_29, %c0_30, %c0_31] : memref<1x8x128xf32, #tpu.memory_space<vmem>>, vector<1x8x128xf32>
      tpu.vector_store %arg5[%c0_29, %c0_30, %c0_31], %82 {strides = array<i32>} : memref<1x8x128xf32, #tpu.memory_space<vmem>>, vector<1x8x128xf32>,
    } else {
    }
    %c0 = arith.constant 0 : index
    %c0_1 = arith.constant 0 : index
    %3 = vector.load %arg3[%c0, %c0_1] : memref<8x32xf32, #tpu.memory_space<vmem>>, vector<8x32xf32>
    %c0_2 = arith.constant 0 : index
    %c0_3 = arith.constant 0 : index
    %4 = vector.load %arg4[%c0_2, %c0_3] : memref<8x1xi32, #tpu.memory_space<vmem>>, vector<8x1xi32>
    %c0_4 = arith.constant 0 : index
    %5 = memref.load %arg2[%c0_4] : memref<1xf32, #tpu.memory_space<smem>>
    %cst = arith.constant dense<0xFF800000> : vector<8xf32>
    %6 = vector.multi_reduction <maximumf>, %3, %cst [1] : vector<8x32xf32> to vector<8xf32>
    %7 = vector.shape_cast %6 : vector<8xf32> to vector<8x1xf32>
    %8 = vector.broadcast %7 : vector<8x1xf32> to vector<8x32xf32>
    %9 = arith.subf %3, %8 : vector<8x32xf32>
    %10 = math.exp %9 : vector<8x32xf32>
    %cst_5 = arith.constant dense<0.000000e+00> : vector<8xf32>
    %11 = vector.multi_reduction <add>, %10, %cst_5 [1] : vector<8x32xf32> to vector<8xf32>
    %12 = vector.shape_cast %11 : vector<8xf32> to vector<8x1xf32>
    %13 = arith.mulf %10, %9 : vector<8x32xf32>
    %cst_6 = arith.constant dense<0.000000e+00> : vector<8xf32>
    %14 = vector.multi_reduction <add>, %13, %cst_6 [1] : vector<8x32xf32> to vector<8xf32>
    %15 = vector.shape_cast %14 : vector<8xf32> to vector<8x1xf32>
    %cst_7 = arith.constant 1.000000e+00 : f32
    %16 = vector.broadcast %cst_7 : f32 to vector<8x1xf32>
    %17 = arith.divf %16, %12 : vector<8x1xf32>
    %18 = math.log %12 : vector<8x1xf32>
    %19 = arith.mulf %17, %15 : vector<8x1xf32>
    %20 = arith.subf %18, %19 : vector<8x1xf32>
    %21 = tpu.iota {dimensions = array<i32: 1>} : vector<8x32xi32>
    %22 = vector.broadcast %4 : vector<8x1xi32> to vector<8x32xi32>
    %23 = arith.cmpi eq, %21, %22 : vector<8x32xi32>
    %cst_8 = arith.constant 0xFF800000 : f32
    %24 = vector.broadcast %cst_8 : f32 to vector<8x32xf32>
    %25 = arith.select %23, %3, %24 : vector<8x32xi1>, vector<8x32xf32>
    %cst_9 = arith.constant dense<0xFF800000> : vector<8xf32>
    %26 = vector.multi_reduction <maximumf>, %25, %cst_9 [1] : vector<8x32xf32> to vector<8xf32>
    %27 = vector.shape_cast %26 : vector<8xf32> to vector<8x1xf32>
    %28 = arith.cmpf oeq, %27, %7 : vector<8x1xf32>
    %29 = tpu.iota {dimensions = array<i32: 0>} : vector<8x1xi32>
    %c1_i32 = arith.constant 1 : i32
    %30 = arith.muli %arg0, %c1_i32 : i32
    %31 = arith.addi %30, %arg1 : i32
    %c8_i32 = arith.constant 8 : i32
    %32 = arith.muli %31, %c8_i32 : i32
    %33 = vector.broadcast %32 : i32 to vector<8x1xi32>
    %34 = arith.addi %29, %33 : vector<8x1xi32>
    %c13_i32 = arith.constant 13 : i32
    %35 = vector.broadcast %c13_i32 : i32 to vector<8x1xi32>
    %36 = arith.cmpi slt, %34, %35 : vector<8x1xi32>
    %37 = vector.broadcast %5 : f32 to vector<8x1xf32>
    %38 = arith.cmpf ole, %20, %37 : vector<8x1xf32>
    %39 = math.tanh %20 : vector<8x1xf32>
    %cst_10 = arith.constant 1.000000e+00 : f32
    %40 = vector.broadcast %cst_10 : f32 to vector<8x1xf32>
    %41 = arith.subf %40, %17 : vector<8x1xf32>
    %42 = arith.select %28, %17, %41 : vector<8x1xi1>, vector<8x1xf32>
    %cst_11 = arith.constant 1.000000e+00 : f32
    %43 = vector.broadcast %cst_11 : f32 to vector<8x1xf32>
    %44 = arith.subf %43, %39 : vector<8x1xf32>
    %45 = arith.select %38, %44, %39 : vector<8x1xi1>, vector<8x1xf32>
    %46 = arith.mulf %42, %45 : vector<8x1xf32>
    %cst_12 = arith.constant 0.000000e+00 : f32
    %47 = vector.broadcast %cst_12 : f32 to vector<8x1xf32>
    %48 = arith.select %36, %46, %47 : vector<8x1xi1>, vector<8x1xf32>
    %49 = arith.xori %28, %38 : vector<8x1xi1>
    %cst_13 = arith.constant dense<true> : vector<8x1xi1>
    %50 = arith.xori %49, %cst_13 : vector<8x1xi1>
    %cst_14 = arith.constant 0.000000e+00 : f32
    %51 = vector.broadcast %cst_14 : f32 to vector<8x1xf32>
    %52 = arith.select %50, %48, %51 : vector<8x1xi1>, vector<8x1xf32>
    %53 = vector.shape_cast %52 : vector<8x1xf32> to vector<1x8x1xf32>
    %cst_15 = arith.constant dense<0.000000e+00> : vector<1xf32>
    %54 = vector.multi_reduction <add>, %53, %cst_15 [1, 2] : vector<1x8x1xf32> to vector<1xf32>
    %55 = vector.shape_cast %54 : vector<1xf32> to vector<1x1x1xf32>
    %56 = vector.extract %55[0, 0, 0] : f32 from vector<1x1x1xf32>
    %57 = vector.shape_cast %48 : vector<8x1xf32> to vector<1x8x1xf32>
    %cst_16 = arith.constant dense<0.000000e+00> : vector<1xf32>
    %58 = vector.multi_reduction <add>, %57, %cst_16 [1, 2] : vector<1x8x1xf32> to vector<1xf32>
    %59 = vector.shape_cast %58 : vector<1xf32> to vector<1x1x1xf32>
    %60 = vector.extract %59[0, 0, 0] : f32 from vector<1x1x1xf32>
    %61 = tpu.iota {dimensions = array<i32: 0>} : vector<8x128xi32>
    %62 = tpu.iota {dimensions = array<i32: 1>} : vector<8x128xi32>
    %c0_i32_17 = arith.constant 0 : i32
    %63 = vector.broadcast %c0_i32_17 : i32 to vector<8x128xi32>
    %64 = arith.cmpi eq, %61, %63 : vector<8x128xi32>
    %c0_i32_18 = arith.constant 0 : i32
    %65 = vector.broadcast %c0_i32_18 : i32 to vector<8x128xi32>
    %66 = arith.cmpi eq, %62, %65 : vector<8x128xi32>
    %67 = arith.andi %64, %66 : vector<8x128xi1>
    %c0_i32_19 = arith.constant 0 : i32
    %68 = vector.broadcast %c0_i32_19 : i32 to vector<8x128xi32>
    %69 = arith.cmpi eq, %61, %68 : vector<8x128xi32>
    %c1_i32_20 = arith.constant 1 : i32
    %70 = vector.broadcast %c1_i32_20 : i32 to vector<8x128xi32>
    %71 = arith.cmpi eq, %62, %70 : vector<8x128xi32>
    %72 = arith.andi %69, %71 : vector<8x128xi1>
    %cst_21 = arith.constant 0.000000e+00 : f32
    %73 = vector.broadcast %60 : f32 to vector<8x128xf32>
    %74 = vector.broadcast %cst_21 : f32 to vector<8x128xf32>
    %75 = arith.select %72, %73, %74 : vector<8x128xi1>, vector<8x128xf32>
    %76 = vector.broadcast %56 : f32 to vector<8x128xf32>
    %77 = arith.select %67, %76, %75 : vector<8x128xi1>, vector<8x128xf32>
    %c0_22 = arith.constant 0 : index
    %c0_23 = arith.constant 0 : index
    %c0_24 = arith.constant 0 : index
    %78 = vector.load %arg5[%c0_22, %c0_23, %c0_24] : memref<1x8x128xf32, #tpu.memory_space<vmem>>, vector<1x8x128xf32>
    %79 = vector.shape_cast %77 : vector<8x128xf32> to vector<1x8x128xf32>
    %80 = arith.addf %78, %79 : vector<1x8x128xf32>
    %c0_25 = arith.constant 0 : index
    %c0_26 = arith.constant 0 : index
    %c0_27 = arith.constant 0 : index
    %81 = vector.load %arg5[%c0_25, %c0_26, %c0_27] : memref<1x8x128xf32, #tpu.memory_space<vmem>>, vector<1x8x128xf32>
    tpu.vector_store %arg5[%c0_25, %c0_26, %c0_27], %80 {strides = array<i32>} : memref<1x8x128xf32, #tpu.memory_space<vmem>>, vector<1x8x128xf32>,
    return
  }
  func.func @transform_0(%arg0: i32, %arg1: i32) -> i32 {
    %c0_i32 = arith.constant 0 : i32
    %c0_i32_0 = arith.constant 0 : i32
    return %c0_i32 : i32
  }
  func.func @transform_1(%arg0: i32, %arg1: i32) -> (i32, i32) {
    %c1_i32 = arith.constant 1 : i32
    %0 = arith.muli %arg0, %c1_i32 : i32
    %1 = arith.addi %0, %arg1 : i32
    %c0_i32 = arith.constant 0 : i32
    %c0_i32_0 = arith.constant 0 : i32
    return %1, %c0_i32 : i32, i32
  }
  func.func @transform_2(%arg0: i32, %arg1: i32) -> (i32, i32) {
    %c1_i32 = arith.constant 1 : i32
    %0 = arith.muli %arg0, %c1_i32 : i32
    %1 = arith.addi %0, %arg1 : i32
    %c0_i32 = arith.constant 0 : i32
    %c0_i32_0 = arith.constant 0 : i32
    return %1, %c0_i32 : i32, i32
  }
  func.func @transform_3(%arg0: i32, %arg1: i32) -> (i32, i32, i32) {
    %c0_i32 = arith.constant 0 : i32
    %c0_i32_0 = arith.constant 0 : i32
    %c0_i32_1 = arith.constant 0 : i32
    return %arg0, %c0_i32, %c0_i32_0 : i32, i32, i32
  }
}

</mosaic_0001>

<bundles_post_ra>
// kernel: tpu_custom_call.1
= control target key start
LH: loop header
LB: loop body
LE: loop exit
PB: predicated region body
PF: predicated region fallthrough
CT: control target
= control target key end

     0   :  { %s709_s0 = inlined_call_operand.<no memory space> [shape: f32[1], index: 0, kind: input, shape index: {}]   ;;  %s710_s1 = inlined_call_operand.vmem [shape: f32[16,32], index: 1, kind: input, shape index: {}]   ;;  %s711_s2 = inlined_call_operand.vmem [shape: s32[16,1], index: 2, kind: input, shape index: {}]   ;;  %s712_s3 = inlined_call_operand.hbm [shape: f32[2,8,128], index: 3, kind: output, shape index: {}]  }
   0x1   :  { %8 = sst [smem:[#allocation2]] %s709_s0 }
   0x2   :  { %9 = vsyncpa [#allocation4], 0 }
   0x3   :  { %11 = vsyncpa [#allocation4 + $0x1], 0  ;;  %s584_s14 = smov 0   ;;  %s586_s15 = smov 0  }
   0x4   :  { %s588_s16 = smov 0   ;;  %s590_s17 = smov 0  }
   0x5   :  { %s592_s18 = smov 0   ;;  %s594_s19 = smov 0  }
   0x6 LB: > { %s394_s0 = sadd.s32 4294967295, %s556_s19   ;;  %s395_s20 = sadd.s32 4294967294, %s556_s19   ;;  %s556_s19 = sphi %s594_s19, %s17_s19   ;;  %s552_s18 = sphi %s592_s18, %s719_s18   ;;  %s548_s17 = sphi %s590_s17, %s718_s17   ;;  %s544_s16 = sphi %s588_s16, %s717_s16   ;;  %s540_s15 = sphi %s586_s15, %s716_s15   ;;  %s536_s14 = sphi %s584_s14, %s715_s14  }
   0x7   : > { %s29_s21 = sadd.s32 1, %s552_s18  ;;  %s113_s22 = sadd.s32 1, %s544_s16 }
   0x8   : > { %p31_p0 = scmp.ge.s32.totalorder %s29_s21, 2  ;;  %p123_p1 = scmp.ne.s32.totalorder %s544_s16, %s540_s15 }
   0x9   : > { %p124_p2 = scmp.eq.s32.totalorder %s394_s0, 1  ;;  %p129_p3 = scmp.ne.s32.totalorder %s540_s15, %s536_s14 }
   0xa   : > { %s721_s21 = smov (%p31_p0, %s29_s21), 0  ;;  %p130_p5 = scmp.eq.s32.totalorder %s395_s20, 1 }
   0xb   : > { %p624_p4 = por %p124_p2, %p123_p1  ;;  %s110_s24 = ssub.s32 %s552_s18, %s721_s21 }
   0xc   : > { %p398_p6 = scmp.ge.s32.totalorder %s556_s19, 1  ;;  %p111_p7 = scmp.eq.s32.totalorder %s110_s24, 0 }
   0xd   : > { %p631_p8 = por %p130_p5, %p129_p3  ;;  %p169_p9 = scmp.lt.s32.totalorder %s556_s19, 3 }
   0xe   : > { %s637_s26 = scalar_select %p111_p7, %s544_s16, %s113_s22  }
   0xf   : > { %p170_p10 = pnand %p398_p6, %p169_p9 }
  0x10   : > { %p199_p11 = scmp.lt.s32.totalorder (!%p170_p10), %s548_s17, 1  ;;  %v558_v0 = vmov (!%p170_p10), 0   ;;  %vm218_vm0 = vcmask (!%p170_p10), 261120   ;;  %v238_v7 = vlaneseq (!%p170_p10)  ;;  %s217_s8 = sld [smem:[#allocation2]] (!%p170_p10)  ;;  %vm268_vm6 = vcmask (!%p170_p10), 7168  }
  0x11   : > { %173 = sbr.rel (%p170_p10) target bundleno = 590 (0x24e), region = 32  ;;  %469 = vset.pattern.permute.xlu0 (!%p170_p10), %v558_v0  ;;  %s402_s9 = sshll.u32 (!%p170_p10), %s548_s17, 3  ;;  %vm559_vm7 = vmmov (!%p170_p10), 1  }
  0x12   : > { %v648_v8 = vand.u32 (!%p170_p10), 127, %v238_v7  ;;  %v250_v23 = vshrl.u32 (!%p170_p10), %v238_v7, 7  ;;  %v253_v24 = vstv (!%p170_p10), %s402_s9  ;;  %s195_s10 = sand.u32 (!%p170_p10), 1, %s540_s15   ;;  %s404_s0 = sshll.u32 (!%p170_p10), %s548_s17, 7 }
  0x13   : > { %s399_s11 = sshll.u32 (!%p170_p10), %s195_s10, 3  ;;  %s302_s29 = scalar_lea.sflag (!%p170_p10), [#allocation4], %s195_s10 }
  0x14   : > { %v254_v28 = vadd.s32 (!%p170_p10), %v253_v24, %v250_v23  ;;  %vm289_vm9 = vcmp.eq.s32.totalorder (!%p170_p10), %v250_v23, 0  ;;  %vm292_vm10 = vcmp.eq.s32.totalorder (!%p170_p10), %v648_v8, 1  ;;  %vm290_vm11 = vcmp.eq.s32.totalorder (!%p170_p10), %v648_v8, 0  ;;  %s197_s20 = scalar_lea.vmem (!%p170_p10), [#allocation3], %s399_s11 }
  0x15   : > { %vm293_vm12 = vmand (!%p170_p10), %vm289_vm9, %vm292_vm10  ;;  %s315_s22 = sshll.u32 (!%p170_p10), %s197_s20, 4  ;;  %s664_s22 = int_to_ptr.vmem [resolvable:$true] %s315_s22 }
  0x16   : > { %v256_v25 = vstv (!%p170_p10), %s217_s8  ;;  %vm255_vm5 = vcmp.lt.s32.totalorder (!%p170_p10), %v254_v28, 13  ;;  %vm291_vm13 = vmand (!%p170_p10), %vm289_vm9, %vm290_vm11  ;;  %s478_s30 = scalar_lea.vmem (!%p170_p10), %s664_s22, 128 }
  0x17   : > { %p479_p12 = scmp.ne.s32.totalorder (!%p170_p10), %s664_s22, %s478_s30 }
  0x18   : > { %s200_s27 = scalar_select %p199_p11, %s548_s17, 1 }
  0x19   : > { %p480_p13 = pnand %p479_p12, %p624_p4  ;;  %s560_s17 = smov [#allocation3]  }
  0x1a   : > { %s400_s28 = sshll.u32 %s200_s27, 3 }
  0x1b   : > { %s202_s4 = scalar_lea.vmem %s710_s1, %s400_s28  ;;  %s208_s7 = scalar_lea.vmem %s711_s2, %s400_s28 }
  0x1c   : > { %v215_v1 = vld [vmem:[%s202_s4] sm:$0xff]  ;;  %s662_s28 = scalar_lea.hbm %s712_s3, %s404_s0  ;;  %p481_p0 = pneg %p480_p13 }
  0x1d   : > { %v219_v2 = vsel %vm218_vm0, %v215_v1, -inf  ;;  %v216_v3 = vld [vmem:[%s208_s7] sm:$0xff]  ;;  %s482_s4 = sshll.u32 %s560_s17, 4  ;;  %s483_s4 = int_to_ptr.vmem [resolvable:$false] %s482_s4 }
  0x1e   : > { %220 = vmax.xlane.f32.xlu0 %v219_v2  ;;  %s484_s5 = scalar_lea.vmem %s483_s4, 256  ;;  %p485_p1 = scmp.lt.s32.totalorder %s664_s22, %s483_s4 }
  0x1f   : > { %p486_p2 = scmp.lt.s32.totalorder %s484_s5, %s478_s30 }
  0x21   : > { %p487_p3 = por %p486_p2, %p485_p1 }
  0x23   : > { %p488_p5 = pnand %p487_p3, %p481_p0 }
  0x34   : > { %241 = vperm.xlu0 %469, %v216_v3  }
  0xab   : > { %v221_v4 = vpop.xlane.xlu0 %220 }
  0xac   : > { %v222_v5 = vsub.f32 %v215_v1, %v221_v4 }
  0xae   : > { %v223_v6 = vmul.f32 1.442695, %v222_v5 }
  0xb0   : > { %470 = vpow2.f32 %v223_v6 }
  0xb3   : > { %v242_v9 = vpop.permute.xlu0 %241 }
  0xb4   : > { %vm243_vm1 = vcmp.eq.s32.totalorder %v648_v8, %v242_v9 }
  0xb5   : > { %v244_v13 = vsel %vm243_vm1, %v215_v1, -inf }
  0xb6   : > { %v245_v15 = vsel %vm218_vm0, %v244_v13, -inf }
  0xba   : > { %v471_v10 = vpop.eup %470 }
  0xbb   : > { %v225_v11 = vsel %vm218_vm0, %v471_v10, 0.0  ;;  %v228_v12 = vmul.f32 %v471_v10, %v222_v5 }
  0xbc   : > { %226 = vadd.xlane.f32.xlu1 %v225_v11 }
  0xbd   : > { %v229_v14 = vsel %vm218_vm0, %v228_v12, 0.0 }
  0xc0   : > { %230 = vadd.xlane.f32.xlu1 %v229_v14 }
  0xc4   : > { %246 = vmax.xlane.f32.xlu1 %v245_v15 }
 0x149   : > { %v227_v16 = vpop.xlane.xlu1 %226 }
 0x14a   : > { %472 = vrcp.f32 %v227_v16 }
 0x14b   : > { %474 = vlog2.f32 %v227_v16 }
 0x14d   : > { %v231_v18 = vpop.xlane.xlu1 %230 }
 0x151   : > { %v247_v27 = vpop.xlane.xlu1 %246 }
 0x152   : > { %vm248_vm3 = vcmp.eq.f32.partialorder %v247_v27, %v221_v4 }
 0x154   : > { %v473_v17 = vpop.eup %472 }
 0x155   : > { %v475_v19 = vpop.eup %474  ;;  %v236_v20 = vmul.f32 %v473_v17, %v231_v18  ;;  %v259_v26 = vsub.f32 1.0, %v473_v17 }
 0x156   : > { %v235_v21 = vmul.f32 0.6931472, %v475_v19 }
 0x157   : > { %v260_v32 = vsel %vm248_vm3, %v473_v17, %v259_v26 }
 0x158   : > { %v237_v22 = vsub.f32 %v235_v21, %v236_v20 }
 0x15a   : > { %476 = vtanh.f32 %v237_v22  ;;  %vm257_vm2 = vcmp.le.f32.partialorder %v237_v22, %v256_v25 }
 0x15b   : > { %vm265_vm4 = vmxor %vm248_vm3, %vm257_vm2 }
 0x15c   : > { %vm266_vm8 = vmxor %vm265_vm4, %vm559_vm7 }
 0x164   : > { %v477_v29 = vpop.eup %476 }
 0x165   : > { %v261_v30 = vsub.f32 1.0, %v477_v29 }
 0x167   : > { %v262_v31 = vsel %vm257_vm2, %v261_v30, %v477_v29 }
 0x168   : > { %v263_v33 = vmul.f32 %v262_v31, %v260_v32 }
 0x16a   : > { %v264_v34 = vsel %vm255_vm5, %v263_v33, 0.0 }
 0x16b   : > { %v267_v35 = vsel %vm266_vm8, %v264_v34, 0.0  ;;  %v279_v37 = vsel %vm268_vm6, %v264_v34, 0.0 }
 0x16c   : > { %v269_v36 = vsel %vm268_vm6, %v267_v35, 0.0 }
 0x16d   : > { %270 = vadd.xlane.f32.xlu1 %v269_v36 }
 0x171   : > { %280 = vadd.xlane.f32.xlu1 %v279_v37 }
 0x1fa   : > { %v271_v38 = vpop.xlane.xlu1 %270 }
 0x1fb   : > { %v272_v39 = vrot.slane %v271_v38, 4 }
 0x1fd   : > { %v273_v40 = vadd.f32 %v272_v39, %v271_v38 }
 0x1fe   : > { %v281_v41 = vpop.xlane.xlu1 %280 }
 0x1ff   : > { %v274_v42 = vrot.slane %v273_v40, 2  ;;  %v282_v43 = vrot.slane %v281_v41, 4 }
 0x201   : > { %v283_v44 = vadd.f32 %v282_v43, %v281_v41  ;;  %v275_v45 = vadd.f32 %v274_v42, %v273_v40 }
 0x203   : > { %v284_v46 = vrot.slane %v283_v44, 2  ;;  %v276_v47 = vrot.slane %v275_v45, 1 }
 0x205   : > { %v285_v48 = vadd.f32 %v284_v46, %v283_v44  ;;  %v277_v49 = vadd.f32 %v276_v47, %v275_v45 }
 0x207   : > { %407 = vpush %v277_v49  ;;  %v286_v50 = vrot.slane %v285_v48, 1 }
 0x209   : > { %v287_v51 = vadd.f32 %v286_v50, %v285_v48 }
 0x20b   : > { %409 = vpush %v287_v51 }
 0x238   : > { %s408_s12 = spop %407 }
 0x239   : > { %v296_v53 = vstv %s408_s12 }
 0x23c   : > { %s410_s13 = spop %409 }
 0x23d   : > { %v294_v52 = vstv %s410_s13 }
 0x23e   : > { %v295_v54 = vsel %vm293_vm12, %v294_v52, 0.0 }
 0x23f   : > { %v297_v55 = vsel %vm291_vm13, %v296_v53, %v295_v54 }
 0x240   : > { %300 = vst [vmem:[%s197_s20] sm:$0xff] %v297_v55 }
 0x241   : > { %491 = shalt.err (!%p488_p5)
}
 0x242   : > { %s492_s6 = scalar_lea.hbm %s662_s28, 128  ;;  %s496_s9 = scalar_lea.hbm %s712_s3, 256 }
 0x243   : > { %p493_p6 = scmp.ne.s32.totalorder %s662_s28, %s492_s6  ;;  %p497_p10 = scmp.lt.u32.totalorder %s662_s28, %s712_s3 }
 0x244   : > { %p498_p11 = scmp.lt.u32.totalorder %s496_s9, %s492_s6  ;;  %p500_p13 = scmp.lt.u32.totalorder %s492_s6, %s662_s28 }
 0x245   : > { %p494_p7 = pnand %p493_p6, %p624_p4 }
 0x246   : > { %p499_p12 = por %p498_p11, %p497_p10 }
 0x247   : > { %p495_p9 = pneg %p494_p7 }
 0x248   : > { %p501_p0 = por %p500_p13, %p499_p12 }
 0x24a   : > { %p502_p1 = pnand %p501_p0, %p495_p9 }
 0x24c   : > { %505 = shalt.err (!%p502_p1)
}
 0x24d   : > { %411 = dma.vmem_to_hbm [thread:$0]  (%p624_p4), %s664_s22, 128, %s662_s28, %s302_s29  }
 0x24e PF: > { %p417_p2 = scmp.ge.s32.totalorder %s556_s19, 2  ;;  %s327_s12 = sand.u32 1, %s536_s14  }
 0x24f   : > { %s328_s13 = scalar_lea.sflag [#allocation4], %s327_s12 }
 0x250   : > { %p414_p3 = pnand %p417_p2, %p631_p8 }
 0x252   : > { %531 = dma.done.wait (!%p414_p3), %s328_s13, 128  }
 0x253   : > { %533 = vsyncadd (!%p414_p3), %s328_s13, 4294967168  ;;  %s17_s19 = sadd.s32 1, %s556_s19   ;;  %s715_s14 = smov %s540_s15 }
 0x254   : > { %p14_p5 = scmp.ge.s32.totalorder %s17_s19, 4   ;;  %s716_s15 = smov %s544_s16 }
 0x255   : > { %s717_s16 = smov %s637_s26  ;;  %s718_s17 = smov %s552_s18 }
 0x256   : > { %s719_s18 = smov %s721_s21  ;;  %16 = sbr.rel (!%p14_p5) target bundleno = 6 (0x6), region = 74 }
 0x25d   :  { %333 = vsyncpa [#allocation4], 1 }
 0x25e   :  { %335 = vsyncpa [#allocation4 + $0x1], 1 }

</bundles_post_ra>
